<compile_context>
chip_gen: v7x
topology: tpu7x:2x2x1
jax: 0.10.0
libtpu: 0.0.40
codegen_flags: <defaults>
</compile_context>

<pallas_src>
import math

import jax
import jax.numpy as jnp
from jax.experimental import pallas as pl
from jax.experimental.pallas import tpu as pltpu


def _mea_kernel(h_ref, wqkv_ref, bqkv_ref, wo_ref, bo_ref, o_ref):
    """Fused MEALayer forward for one block of Bb batch elements.

    h_ref    : (Bb, S, E)  input tokens
    wqkv_ref : (3, E, E)   W_Q^T*scale, W_K^T, W_V^T   ((in, out) layout)
    bqkv_ref : (3, 1, E)   b_Q*scale, b_K, b_V
    wo_ref   : (E, E)      W_O^T (in, out)
    bo_ref   : (1, E)      b_O
    o_ref    : (Bb, S, E)
    """
    Bb, S, E = h_ref.shape
    h2 = h_ref[...].reshape(Bb * S, E)               # lane-dim preserving reshape

    # Projections batched over all tokens of this block (one MXU pass each).
    # The 1/sqrt(d_k) scale is pre-folded into wqkv[0] / bqkv[0].
    q = jnp.dot(h2, wqkv_ref[0], preferred_element_type=jnp.float32) + bqkv_ref[0]
    k = jnp.dot(h2, wqkv_ref[1], preferred_element_type=jnp.float32) + bqkv_ref[1]
    v = jnp.dot(h2, wqkv_ref[2], preferred_element_type=jnp.float32) + bqkv_ref[2]

    qb = q.reshape(Bb, S, E)
    kb = k.reshape(Bb, S, E)
    vb = v.reshape(Bb, S, E)

    # scores: contract the embedding dim of both operands directly (no k.T).
    s = jnp.einsum("bqd,bkd->bqk", qb, kb,
                   preferred_element_type=jnp.float32)             # (Bb, S, S)

    # softmax over the key axis (matches torch.softmax(..., dim=-1)).
    m = jnp.max(s, axis=-1, keepdims=True)
    p = jnp.exp(s - m)
    inv = pl.reciprocal(jnp.sum(p, axis=-1, keepdims=True), approx=True)
    a = p * inv

    # A @ V  (== A_x @ W_V(H_x) + A_r @ W_V(H_r); the seq split is the identity)
    attn = jnp.einsum("bqk,bkd->bqd", a, vb,
                      preferred_element_type=jnp.float32)           # (Bb, S, E)

    out = jnp.dot(attn.reshape(Bb * S, E), wo_ref[...],
                  preferred_element_type=jnp.float32) + bo_ref[...]
    # TODO(synk): for large E / B*S, present a lane-dense (>=128-wide) output
    # layout and cast matmul operands to bf16 (keep f32 accumulation) on
    # v6e/v7x; at E=32 (2 KiB output) the relayout would cost more than the
    # masked stores it removes.
    o_ref[...] = out.reshape(Bb, S, E).astype(o_ref.dtype)


def mea_layer(h, params, *, batch_blocks=1):
    """h: (B, S, E). Returns (B, S, E), matching MEALayer.forward.

    batch_blocks: number of grid steps over the batch. 1 is best on v5e/v6e
    (single TensorCore); set to 2 on v7x so megacore splits the work.
    """
    B, S, E = h.shape
    assert B % batch_blocks == 0
    Bb = B // batch_blocks

    return pl.pallas_call(
        _mea_kernel,
        out_shape=jax.ShapeDtypeStruct((B, S, E), h.dtype),
        grid=(batch_blocks,),
        in_specs=[
            pl.BlockSpec((Bb, S, E), lambda b: (b, 0, 0)),
            # Constant index_map: weights/biases are DMA'd once and reused.
            pl.BlockSpec((3, E, E), lambda b: (0, 0, 0)),
            pl.BlockSpec((3, 1, E), lambda b: (0, 0, 0)),
            pl.BlockSpec((E, E), lambda b: (0, 0)),
            pl.BlockSpec((1, E), lambda b: (0, 0)),
        ],
        out_specs=pl.BlockSpec((Bb, S, E), lambda b: (b, 0, 0)),
        compiler_params=pltpu.CompilerParams(
            dimension_semantics=("parallel",)),
    )(h, params["w_qkv"], params["b_qkv"], params["w_o"], params["b_o"])


def init_params(key, embed_dim, dtype=jnp.float32):
    """Deterministic synthetic parameters in PyTorch nn.Linear layout."""
    E = embed_dim
    ks = jax.random.split(key, 8)

    def lin(kw, kb):
        w = jax.random.normal(kw, (E, E), dtype) * (1.0 / math.sqrt(E))   # (out, in)
        b = jax.random.normal(kb, (E,), dtype) * 0.01                      # (out,)
        return w, b

    wq, bq = lin(ks[0], ks[1])
    wk, bk = lin(ks[2], ks[3])
    wv, bv = lin(ks[4], ks[5])
    wo, bo = lin(ks[6], ks[7])
    return dict(w_q=wq, b_q=bq, w_k=wk, b_k=bk,
                w_v=wv, b_v=bv, w_o=wo, b_o=bo)


def pack_params(raw, *, embed_dim, num_heads):
    """One-time transform: (out,in)->(in,out) transpose, QKV stacking, and
    folding 1/sqrt(d_k) into W_Q / b_Q (removes the in-kernel score scale)."""
    scale = 1.0 / math.sqrt(embed_dim // num_heads)
    return dict(
        w_qkv=jnp.stack([raw["w_q"].T * scale, raw["w_k"].T, raw["w_v"].T]),   # (3,E,E)
        b_qkv=jnp.stack([raw["b_q"] * scale, raw["b_k"], raw["b_v"]])[:, None, :],  # (3,1,E)
        w_o=raw["w_o"].T,                                                       # (E,E)
        b_o=raw["b_o"][None, :],                                                # (1,E)
    )


def mea_reference(h, raw, *, embed_dim, num_heads):
    """Pure-JAX mirror of the PyTorch forward (including the seq split)."""
    q = h @ raw["w_q"].T + raw["b_q"]
    k = h @ raw["w_k"].T + raw["b_k"]
    d_k = embed_dim // num_heads
    s = jnp.einsum("bqe,bke->bqk", q, k) / math.sqrt(d_k)
    a = jax.nn.softmax(s, axis=-1)
    h_x, h_r = h[:, :2, :], h[:, 2:, :]
    L = h_x.shape[1]
    a_x, a_r = a[:, :, :L], a[:, :, L:]
    v_x = h_x @ raw["w_v"].T + raw["b_v"]
    v_r = h_r @ raw["w_v"].T + raw["b_v"]
    attn = (jnp.einsum("bql,bld->bqd", a_x, v_x)
            + jnp.einsum("bql,bld->bqd", a_r, v_r))
    return attn @ raw["w_o"].T + raw["b_o"]


if __name__ == "__main__":
    B, S, E, H = 2, 8, 32, 4   # batch=2, seq=8, embed_dim=32, num_heads=4

    key = jax.random.PRNGKey(0)
    k_param, k_x = jax.random.split(key)

    raw = init_params(k_param, E)
    params = pack_params(raw, embed_dim=E, num_heads=H)
    x = jax.random.normal(k_x, (B, S, E), jnp.float32)

    out = mea_layer(x, params)
    jax.block_until_ready(out)

    assert out.shape == (B, S, E), out.shape
    ref = mea_reference(x, raw, embed_dim=E, num_heads=H)
    assert jnp.allclose(out, ref, atol=5e-2, rtol=5e-2), (
        float(jnp.max(jnp.abs(out - ref))))
    print("KERNEL_OK")
</pallas_src>

<mosaic_0001>
module attributes {stable_mosaic.version = 11 : i64} {
  func.func @_mea_kernel(%arg0: i32, %arg1: memref<2x8x32xf32, #tpu.memory_space<vmem>>, %arg2: memref<3x32x32xf32, #tpu.memory_space<vmem>>, %arg3: memref<3x1x32xf32, #tpu.memory_space<vmem>>, %arg4: memref<32x32xf32, #tpu.memory_space<vmem>>, %arg5: memref<1x32xf32, #tpu.memory_space<vmem>>, %arg6: memref<2x8x32xf32, #tpu.memory_space<vmem>>) attributes {dimension_semantics = [#tpu.dimension_semantics<parallel>], iteration_bounds = array<i64: 1>, scalar_prefetch = 0 : i64, scratch_operands = 0 : i64, tpu.core_type = #tpu.core_type<tc>, window_params = [{transform_indices = @transform_0, window_bounds = array<i64: 2, 8, 32>}, {pipeline_mode = #tpu.pipeline_mode<synchronous>, transform_indices = @transform_1, window_bounds = array<i64: 3, 32, 32>}, {pipeline_mode = #tpu.pipeline_mode<synchronous>, transform_indices = @transform_2, window_bounds = array<i64: 3, 1, 32>}, {pipeline_mode = #tpu.pipeline_mode<synchronous>, transform_indices = @transform_3, window_bounds = array<i64: 32, 32>}, {pipeline_mode = #tpu.pipeline_mode<synchronous>, transform_indices = @transform_4, window_bounds = array<i64: 1, 32>}, {transform_indices = @transform_5, window_bounds = array<i64: 2, 8, 32>}]} {
    %c0 = arith.constant 0 : index
    %c0_0 = arith.constant 0 : index
    %c0_1 = arith.constant 0 : index
    %0 = vector.load %arg1[%c0, %c0_0, %c0_1] : memref<2x8x32xf32, #tpu.memory_space<vmem>>, vector<2x8x32xf32>
    %1 = vector.shape_cast %0 : vector<2x8x32xf32> to vector<16x32xf32>
    %c0_2 = arith.constant 0 : index
    %c0_3 = arith.constant 0 : index
    %c0_4 = arith.constant 0 : index
    %2 = vector.load %arg2[%c0_2, %c0_3, %c0_4] : memref<3x32x32xf32, #tpu.memory_space<vmem>>, vector<1x32x32xf32>
    %3 = vector.shape_cast %2 : vector<1x32x32xf32> to vector<32x32xf32>
    %cst = arith.constant dense<0.000000e+00> : vector<16x32xf32>
    %4 = tpu.matmul %1, %3, %cst {dimension_numbers = #tpu.dot_dimension_numbers<[1], [0], [0], [1], [0, 0, 1, 1], [], []>} : vector<16x32xf32>, vector<32x32xf32>, vector<16x32xf32> -> vector<16x32xf32>
    %c0_5 = arith.constant 0 : index
    %c0_6 = arith.constant 0 : index
    %c0_7 = arith.constant 0 : index
    %5 = vector.load %arg3[%c0_5, %c0_6, %c0_7] : memref<3x1x32xf32, #tpu.memory_space<vmem>>, vector<1x1x32xf32>
    %6 = vector.shape_cast %5 : vector<1x1x32xf32> to vector<1x32xf32>
    %7 = vector.broadcast %6 : vector<1x32xf32> to vector<16x32xf32>
    %8 = arith.addf %4, %7 : vector<16x32xf32>
    %c1 = arith.constant 1 : index
    %c0_8 = arith.constant 0 : index
    %c0_9 = arith.constant 0 : index
    %9 = vector.load %arg2[%c1, %c0_8, %c0_9] : memref<3x32x32xf32, #tpu.memory_space<vmem>>, vector<1x32x32xf32>
    %10 = vector.shape_cast %9 : vector<1x32x32xf32> to vector<32x32xf32>
    %cst_10 = arith.constant dense<0.000000e+00> : vector<16x32xf32>
    %11 = tpu.matmul %1, %10, %cst_10 {dimension_numbers = #tpu.dot_dimension_numbers<[1], [0], [0], [1], [0, 0, 1, 1], [], []>} : vector<16x32xf32>, vector<32x32xf32>, vector<16x32xf32> -> vector<16x32xf32>
    %c1_11 = arith.constant 1 : index
    %c0_12 = arith.constant 0 : index
    %c0_13 = arith.constant 0 : index
    %12 = vector.load %arg3[%c1_11, %c0_12, %c0_13] : memref<3x1x32xf32, #tpu.memory_space<vmem>>, vector<1x1x32xf32>
    %13 = vector.shape_cast %12 : vector<1x1x32xf32> to vector<1x32xf32>
    %14 = vector.broadcast %13 : vector<1x32xf32> to vector<16x32xf32>
    %15 = arith.addf %11, %14 : vector<16x32xf32>
    %c2 = arith.constant 2 : index
    %c0_14 = arith.constant 0 : index
    %c0_15 = arith.constant 0 : index
    %16 = vector.load %arg2[%c2, %c0_14, %c0_15] : memref<3x32x32xf32, #tpu.memory_space<vmem>>, vector<1x32x32xf32>
    %17 = vector.shape_cast %16 : vector<1x32x32xf32> to vector<32x32xf32>
    %cst_16 = arith.constant dense<0.000000e+00> : vector<16x32xf32>
    %18 = tpu.matmul %1, %17, %cst_16 {dimension_numbers = #tpu.dot_dimension_numbers<[1], [0], [0], [1], [0, 0, 1, 1], [], []>} : vector<16x32xf32>, vector<32x32xf32>, vector<16x32xf32> -> vector<16x32xf32>
    %c2_17 = arith.constant 2 : index
    %c0_18 = arith.constant 0 : index
    %c0_19 = arith.constant 0 : index
    %19 = vector.load %arg3[%c2_17, %c0_18, %c0_19] : memref<3x1x32xf32, #tpu.memory_space<vmem>>, vector<1x1x32xf32>
    %20 = vector.shape_cast %19 : vector<1x1x32xf32> to vector<1x32xf32>
    %21 = vector.broadcast %20 : vector<1x32xf32> to vector<16x32xf32>
    %22 = arith.addf %18, %21 : vector<16x32xf32>
    %23 = vector.shape_cast %8 : vector<16x32xf32> to vector<2x8x32xf32>
    %24 = vector.shape_cast %15 : vector<16x32xf32> to vector<2x8x32xf32>
    %25 = vector.shape_cast %22 : vector<16x32xf32> to vector<2x8x32xf32>
    "tpu.trace_start"() <{level = 10 : i32, message = "bqd,bkd->bqk"}> : () -> ()
    %cst_20 = arith.constant dense<0.000000e+00> : vector<2x8x8xf32>
    %26 = tpu.matmul %23, %24, %cst_20 {dimension_numbers = #tpu.dot_dimension_numbers<[2], [2], [1], [1], [0, 0, 0, 1, 1, 1], [0], [0]>} : vector<2x8x32xf32>, vector<2x8x32xf32>, vector<2x8x8xf32> -> vector<2x8x8xf32>
    "tpu.trace_stop"() : () -> ()
    %cst_21 = arith.constant dense<0xFF800000> : vector<2x8xf32>
    %27 = vector.multi_reduction <maximumf>, %26, %cst_21 [2] : vector<2x8x8xf32> to vector<2x8xf32>
    %28 = vector.shape_cast %27 : vector<2x8xf32> to vector<2x8x1xf32>
    %29 = vector.broadcast %28 : vector<2x8x1xf32> to vector<2x8x8xf32>
    %30 = arith.subf %26, %29 : vector<2x8x8xf32>
    %31 = math.exp %30 : vector<2x8x8xf32>
    %cst_22 = arith.constant dense<0.000000e+00> : vector<2x8xf32>
    %32 = vector.multi_reduction <add>, %31, %cst_22 [2] : vector<2x8x8xf32> to vector<2x8xf32>
    %33 = vector.shape_cast %32 : vector<2x8xf32> to vector<2x8x1xf32>
    %34 = tpu.reciprocal %33 {approx = true} : vector<2x8x1xf32> -> vector<2x8x1xf32>
    %35 = vector.broadcast %34 : vector<2x8x1xf32> to vector<2x8x8xf32>
    %36 = arith.mulf %31, %35 : vector<2x8x8xf32>
    "tpu.trace_start"() <{level = 10 : i32, message = "bqk,bkd->bqd"}> : () -> ()
    %cst_23 = arith.constant dense<0.000000e+00> : vector<2x8x32xf32>
    %37 = tpu.matmul %36, %25, %cst_23 {dimension_numbers = #tpu.dot_dimension_numbers<[2], [1], [1], [2], [0, 0, 0, 1, 1, 2], [0], [0]>} : vector<2x8x8xf32>, vector<2x8x32xf32>, vector<2x8x32xf32> -> vector<2x8x32xf32>
    "tpu.trace_stop"() : () -> ()
    %38 = vector.shape_cast %37 : vector<2x8x32xf32> to vector<16x32xf32>
    %c0_24 = arith.constant 0 : index
    %c0_25 = arith.constant 0 : index
    %39 = vector.load %arg4[%c0_24, %c0_25] : memref<32x32xf32, #tpu.memory_space<vmem>>, vector<32x32xf32>
    %cst_26 = arith.constant dense<0.000000e+00> : vector<16x32xf32>
    %40 = tpu.matmul %38, %39, %cst_26 {dimension_numbers = #tpu.dot_dimension_numbers<[1], [0], [0], [1], [0, 0, 1, 1], [], []>} : vector<16x32xf32>, vector<32x32xf32>, vector<16x32xf32> -> vector<16x32xf32>
    %c0_27 = arith.constant 0 : index
    %c0_28 = arith.constant 0 : index
    %41 = vector.load %arg5[%c0_27, %c0_28] : memref<1x32xf32, #tpu.memory_space<vmem>>, vector<1x32xf32>
    %42 = vector.broadcast %41 : vector<1x32xf32> to vector<16x32xf32>
    %43 = arith.addf %40, %42 : vector<16x32xf32>
    %44 = vector.shape_cast %43 : vector<16x32xf32> to vector<2x8x32xf32>
    %c0_29 = arith.constant 0 : index
    %c0_30 = arith.constant 0 : index
    %c0_31 = arith.constant 0 : index
    %45 = vector.load %arg6[%c0_29, %c0_30, %c0_31] : memref<2x8x32xf32, #tpu.memory_space<vmem>>, vector<2x8x32xf32>
    tpu.vector_store %arg6[%c0_29, %c0_30, %c0_31], %44 {strides = array<i32>} : memref<2x8x32xf32, #tpu.memory_space<vmem>>, vector<2x8x32xf32>,
    return
  }
  func.func @transform_0(%arg0: i32) -> (i32, i32, i32) {
    %c0_i32 = arith.constant 0 : i32
    %c0_i32_0 = arith.constant 0 : i32
    %c0_i32_1 = arith.constant 0 : i32
    return %arg0, %c0_i32, %c0_i32_0 : i32, i32, i32
  }
  func.func @transform_1(%arg0: i32) -> (i32, i32, i32) {
    %c0_i32 = arith.constant 0 : i32
    %c0_i32_0 = arith.constant 0 : i32
    %c0_i32_1 = arith.constant 0 : i32
    %c0_i32_2 = arith.constant 0 : i32
    return %c0_i32, %c0_i32_0, %c0_i32_1 : i32, i32, i32
  }
  func.func @transform_2(%arg0: i32) -> (i32, i32, i32) {
    %c0_i32 = arith.constant 0 : i32
    %c0_i32_0 = arith.constant 0 : i32
    %c0_i32_1 = arith.constant 0 : i32
    %c0_i32_2 = arith.constant 0 : i32
    return %c0_i32, %c0_i32_0, %c0_i32_1 : i32, i32, i32
  }
  func.func @transform_3(%arg0: i32) -> (i32, i32) {
    %c0_i32 = arith.constant 0 : i32
    %c0_i32_0 = arith.constant 0 : i32
    %c0_i32_1 = arith.constant 0 : i32
    return %c0_i32, %c0_i32_0 : i32, i32
  }
  func.func @transform_4(%arg0: i32) -> (i32, i32) {
    %c0_i32 = arith.constant 0 : i32
    %c0_i32_0 = arith.constant 0 : i32
    %c0_i32_1 = arith.constant 0 : i32
    return %c0_i32, %c0_i32_0 : i32, i32
  }
  func.func @transform_5(%arg0: i32) -> (i32, i32, i32) {
    %c0_i32 = arith.constant 0 : i32
    %c0_i32_0 = arith.constant 0 : i32
    %c0_i32_1 = arith.constant 0 : i32
    return %arg0, %c0_i32, %c0_i32_0 : i32, i32, i32
  }
}

</mosaic_0001>

<bundles_post_ra>
// kernel: tpu_custom_call.1
= control target key start
LH: loop header
LB: loop body
LE: loop exit
PB: predicated region body
PF: predicated region fallthrough
CT: control target
= control target key end

     0   :  { %10 = vsyncpa [#allocation3], 0  ;;  %s1173_s0 = inlined_call_operand.hbm [shape: f32[2,8,32], index: 0, kind: input, shape index: {}]   ;;  %s1174_s1 = inlined_call_operand.hbm [shape: f32[3,32,32], index: 1, kind: input, shape index: {}]   ;;  %s1175_s2 = inlined_call_operand.vmem [shape: f32[3,1,32], index: 2, kind: input, shape index: {}]   ;;  %s1176_s3 = inlined_call_operand.hbm [shape: f32[32,32], index: 3, kind: input, shape index: {}]   ;;  %s1177_s4 = inlined_call_operand.vmem [shape: f32[1,32], index: 4, kind: input, shape index: {}]   ;;  %s1178_s5 = inlined_call_operand.hbm [shape: f32[2,8,32], index: 5, kind: output, shape index: {}]  }
   0x1   :  { %11 = vsyncpa [#allocation6], 0 }
   0x2   :  { %12 = vsyncpa [#allocation4], 0  ;;  %s1024_s18 = smov [#allocation5]   ;;  %s1025_s20 = smov [#allocation2]  }
   0x3   :  { %s30_s19 = sshll.u32 %s1024_s18, 4  ;;  %s18_s21 = sshll.u32 %s1025_s20, 4  ;;  %s31_s19 = int_to_ptr.vmem [resolvable:$true] %s30_s19  ;;  %s1062_s21 = int_to_ptr.vmem [resolvable:$true] %s18_s21 }
   0x4   :  { %s930_s24 = scalar_lea.hbm %s1174_s1, 1536 }
   0x5   :  { %p931_p0 = scmp.ne.s32.totalorder %s1174_s1, %s930_s24  ;;  %p934_p1 = scmp.lt.u32.totalorder %s930_s24, %s1174_s1 }
   0x7   :  { %p936_p2 = pnand %p934_p1, %p931_p0 }
   0x9   :  { %939 = shalt.err (!%p936_p2)
}
   0xa   :  { %s940_s29 = scalar_lea.vmem %s31_s19, 1536  ;;  %p945_p4 = scmp.lt.s32.totalorder %s31_s19, %s31_s19 }
   0xb   :  { %p941_p3 = scmp.ne.s32.totalorder %s31_s19, %s940_s29  ;;  %p946_p5 = scmp.lt.s32.totalorder %s940_s29, %s940_s29 }
   0xd   :  { %p947_p6 = por %p946_p5, %p945_p4 }
   0xf   :  { %p948_p7 = pnand %p947_p6, %p941_p3 }
  0x11   :  { %951 = shalt.err (!%p948_p7)
}
  0x12   :  { %s1026_s30 = smov 128   ;;  %s1027_s6 = smov 8  }
  0x13   :  { %36 = dma.hbm_to_vmem [thread:$0]  %s1174_s1, 1536, %s31_s19, [#allocation6], %s1026_s30, %s1026_s30, %s1027_s6  }
  0x14   :  { %s952_s11 = scalar_lea.hbm %s1173_s0, 256 }
  0x15   :  { %p953_p8 = scmp.ne.s32.totalorder %s1173_s0, %s952_s11  ;;  %p956_p9 = scmp.lt.u32.totalorder %s952_s11, %s1173_s0 }
  0x17   :  { %p958_p10 = pnand %p956_p9, %p953_p8 }
  0x19   :  { %961 = shalt.err (!%p958_p10)
}
  0x1a   :  { %s962_s16 = scalar_lea.vmem %s1062_s21, 256  ;;  %p967_p12 = scmp.lt.s32.totalorder %s1062_s21, %s1062_s21 }
  0x1b   :  { %p963_p11 = scmp.ne.s32.totalorder %s1062_s21, %s962_s16  ;;  %p968_p13 = scmp.lt.s32.totalorder %s962_s16, %s962_s16 }
  0x1d   :  { %p969_p0 = por %p968_p13, %p967_p12 }
  0x1f   :  { %p970_p1 = pnand %p969_p0, %p963_p11 }
  0x21   :  { %973 = shalt.err (!%p970_p1)
}
  0x22   :  { %24 = dma.hbm_to_vmem [thread:$0]  %s1173_s0, 256, %s1062_s21, [#allocation3], %s1026_s30, %s1026_s30, %s1027_s6  }
  0x23   :  { %s1028_s18 = smov [#allocation7]   ;;  %s974_s23 = scalar_lea.hbm %s1176_s3, 512 }
  0x24   :  { %s44_s19 = sshll.u32 %s1028_s18, 4  ;;  %p975_p2 = scmp.ne.s32.totalorder %s1176_s3, %s974_s23  ;;  %s45_s19 = int_to_ptr.vmem [resolvable:$true] %s44_s19 }
  0x25   :  { %p978_p3 = scmp.lt.u32.totalorder %s974_s23, %s1176_s3 }
  0x27   :  { %p980_p4 = pnand %p978_p3, %p975_p2 }
  0x29   :  { %983 = shalt.err (!%p980_p4)
}
  0x2a   :  { %s984_s28 = scalar_lea.vmem %s45_s19, 512  ;;  %p989_p6 = scmp.lt.s32.totalorder %s45_s19, %s45_s19 }
  0x2b   :  { %p985_p5 = scmp.ne.s32.totalorder %s45_s19, %s984_s28  ;;  %p990_p7 = scmp.lt.s32.totalorder %s984_s28, %s984_s28 }
  0x2d   :  { %p991_p8 = por %p990_p7, %p989_p6 }
  0x2f   :  { %p992_p9 = pnand %p991_p8, %p985_p5 }
  0x31   :  { %995 = shalt.err (!%p992_p9)
}
  0x32   :  { %50 = dma.hbm_to_vmem [thread:$0]  %s1176_s3, 512, %s45_s19, [#allocation6], %s1026_s30, %s1026_s30, %s1027_s6  }
  0x33   :  { %1018 = dma.done.wait [#allocation3], 256  }
  0x34   :  { %1019 = vsyncadd [#allocation3], 4294967040 }
  0x35   :  { %1020 = dma.done.wait [#allocation6], 2048  }
  0x36   :  { %1021 = vsyncadd [#allocation6], 4294965248  ;;  %v158_v0 = vld [vmem:[#allocation5 + $0x20] sm:$0xff]  ;;  %v159_v1 = vld [vmem:[#allocation5 + $0x28] sm:$0xff]  ;;  %vm75_vm0 = vcmask 261120   ;;  %v1029_v14 = vmov 0.0  }
  0x37   :  { %v64_v2 = vld [vmem:[#allocation5] sm:$0xff]  ;;  %v890_v3 = vpack.c.bf16 %v159_v1, %v158_v0  ;;  %v65_v4 = vld [vmem:[#allocation5 + $0x8] sm:$0xff]  ;;  %v160_v5 = vld [vmem:[#allocation5 + $0x30] sm:$0xff]  ;;  %vm1030_vm1 = vmmov 0   ;;  %vm485_vm2 = vcmask 64512   ;;  %s1031_s12 = smov [#allocation8]  }
  0x38   :  { %v161_v6 = vld [vmem:[#allocation5 + $0x38] sm:$0xff]  ;;  %v882_v7 = vpack.c.bf16 %v65_v4, %v64_v2  ;;  %v66_v9 = vld [vmem:[#allocation5 + $0x10] sm:$0xff]  ;;  %v246_v25 = vld [vmem:[#allocation5 + $0x40] sm:$0xff]  ;;  %s753_s13 = sshll.u32 %s1031_s12, 4  ;;  %s754_s13 = int_to_ptr.vmem [resolvable:$true] %s753_s13 }
  0x39   :  { %v894_v8 = vpack.c.bf16 %v161_v6, %v160_v5  ;;  %v67_v10 = vld [vmem:[#allocation5 + $0x18] sm:$0xff]  ;;  %v62_v11 = vld [vmem:[#allocation2] sm:$0xff]  ;;  %891 = vmatprep.subr.bf16.mxu1 %v890_v3  ;;  %v247_v26 = vld [vmem:[#allocation5 + $0x48] sm:$0xff]  ;;  %s996_s14 = scalar_lea.vmem %s754_s13, 256  ;;  %p1001_p11 = scmp.lt.s32.totalorder %s754_s13, %s754_s13 }
  0x3a   :  { %v886_v12 = vpack.c.bf16 %v67_v10, %v66_v9  ;;  %837 = vmatprep.mubr.msk.f32.mxu1 %vm75_vm0, %v62_v11  ;;  %893 = vmatpush3.bf16.msra.mxu1 %v890_v3  ;;  %v63_v13 = vld [vmem:[#allocation2 + $0x8] sm:$0xff]  ;;  %v770_v15 = vld [vmem:[%s1175_s2 + $0x1] ss:$0 sm:$0xff]  ;;  %v766_v17 = vld [vmem:[%s1175_s2] ss:$0 sm:$0xff]  ;;  %v898_v28 = vpack.c.bf16 %v247_v26, %v246_v25  ;;  %p997_p10 = scmp.ne.s32.totalorder %s754_s13, %s996_s14  ;;  %p1002_p12 = scmp.lt.s32.totalorder %s996_s14, %s996_s14 }
  0x3b   :  { %883 = vmatprep.subr.bf16.mxu0 %v882_v7  ;;  %895 = vmatprep.subr.bf16.mxu1 %v894_v8  ;;  %v248_v27 = vld [vmem:[#allocation5 + $0x50] sm:$0xff]  ;;  %v249_v29 = vld [vmem:[#allocation5 + $0x58] sm:$0xff]  ;;  %v654_v52 = vld [vmem:[#allocation7] sm:$0xff] }
  0x3c   :  { %885 = vmatpush3.bf16.msra.mxu0 %v882_v7  ;;  %826 = vmatprep.mubr.msk.f32.mxu0 %vm75_vm0, %v62_v11  ;;  %v902_v30 = vpack.c.bf16 %v249_v29, %v248_v27  ;;  %v774_v48 = vld [vmem:[%s1175_s2 + $0x2] ss:$0 sm:$0xff]  ;;  %v655_v53 = vld [vmem:[#allocation7 + $0x8] sm:$0xff]  ;;  %v657_v62 = vld [vmem:[#allocation7 + $0x18] sm:$0xff]  ;;  %p1003_p13 = por %p1002_p12, %p1001_p11 }
  0x3d   :  { %887 = vmatprep.subr.bf16.mxu0 %v886_v12  ;;  %v906_v54 = vpack.c.bf16 %v655_v53, %v654_v52  ;;  %v656_v61 = vld [vmem:[#allocation7 + $0x10] sm:$0xff] }
  0x3e   :  { %897 = vmatpush3.bf16.msra.mxu1 %v894_v8  ;;  %v910_v63 = vpack.c.bf16 %v657_v62, %v656_v61  ;;  %v783_v4 = vld [vmem:[%s1177_s4] ss:$0 sm:$0xff]  ;;  %p1004_p0 = pnand %p1003_p13, %p997_p10 }
  0x3f   :  { %851 = vmatprep.subr.mxu1 %v1029_v14 }
  0x40   :  { %889 = vmatpush3.bf16.msra.mxu0 %v886_v12 }
  0x41   :  { %838 = vmatmul.mubr.msk.f32.vlgmr.msra.gmra.mrb[0].mxu1 %vm75_vm0, %v63_v13  ;;  %899 = vmatprep.subr.bf16.mxu0 %v898_v28 }
  0x42   :  { %853 = vmatprep.mubr.msk.f32.mxu1 %vm1030_vm1, %v1029_v14 }
  0x43   :  { %827 = vmatmul.mubr.msk.f32.vlgmr.msra.gmra.mrb[0].mxu0 %vm75_vm0, %v63_v13 }
  0x44   :  { %848 = vmatprep.mubr.msk.f32.mxu0 %vm75_vm0, %v62_v11  ;;  %901 = vmatpush3.bf16.msra.mxu0 %v898_v28 }
  0x45   :  { %903 = vmatprep.subr.bf16.mxu0 %v902_v30 }
  0x48   :  { %905 = vmatpush3.bf16.msra.mxu0 %v902_v30 }
  0x49   :  { %907 = vmatprep.subr.bf16.mxu0 %v906_v54 }
  0x4b   :  { %849 = vmatmul.mubr.msk.f32.vlgmr.msra.gmra.mrb[2].mxu0 %vm75_vm0, %v63_v13 }
  0x4c   :  { %909 = vmatpush3.bf16.msra.mxu0 %v906_v54 }
  0x4d   :  { %911 = vmatprep.subr.bf16.mxu0 %v910_v63 }
  0x50   :  { %913 = vmatpush3.bf16.msra.mxu0 %v910_v63 }
 0x114   :  { %v839_v16 = vpop.f32.mrb[0].mxu1 }
 0x115   :  { %v236_v18 = vpop.f32.mrb[1].mxu1  ;;  %v242_v23 = vadd.f32 %v839_v16, %v770_v15 }
 0x116   :  { %v828_v19 = vpop.f32.mrb[0].mxu0  ;;  %v237_v20 = vadd.f32 %v770_v15, %v236_v18 }
 0x117   :  { %v148_v21 = vpop.f32.mrb[1].mxu0  ;;  %v154_v24 = vadd.f32 %v828_v19, %v766_v17 }
 0x118   :  { %v149_v22 = vadd.f32 %v766_v17, %v148_v21  ;;  %852 = vmatpush3.xpose.msk.msra.mxu1 %vm75_vm0, %v237_v20 }
 0x119   :  { %856 = vmatprep.subr.mxu1 %v1029_v14 }
 0x11b   :  { %854 = vmatmul.mubr.msk.f32.vlgmr.msra.gmra.mrb[2].mxu1 %vm75_vm0, %v149_v22 }
 0x11c   :  { %857 = vmatpush3.xpose.msk.msra.mxu1 %vm75_vm0, %v242_v23  ;;  %858 = vmatprep.mubr.msk.f32.mxu1 %vm1030_vm1, %v1029_v14 }
 0x11d   :  { %861 = vmatprep.subr.mxu1 %v1029_v14 }
 0x11e   :  { %v850_v47 = vpop.f32.mrb[2].mxu0 }
 0x11f   :  { %859 = vmatmul.mubr.msk.f32.vlgmr.msra.gmra.mrb[4].mxu1 %vm75_vm0, %v154_v24  ;;  %v324_v49 = vpop.f32.mrb[3].mxu0  ;;  %v330_v50 = vadd.f32 %v850_v47, %v774_v48 }
 0x120   :  { %863 = vmatprep.mubr.msk.f32.mxu1 %vm1030_vm1, %v1029_v14  ;;  %v325_v51 = vadd.f32 %v774_v48, %v324_v49 }
 0x122   :  { %862 = vmatpush3.msra.mxu1 %v325_v51 }
 0x123   :  { %866 = vmatprep.subr.mxu1 %v1029_v14 }
 0x1ee   :  { %v405_v31 = vpop.f32.mrb[2].mxu1 }
 0x1ef   :  { %v855_v32 = vpop.f32.mrb[3].mxu1  ;;  %v486_v33 = vsel %vm485_vm2, %v405_v31, -inf }
 0x1f0   :  { %487 = vmax.xlane.f32.xlu0 %v486_v33 }
 0x1f2   :  { %v481_v34 = vpop.f32.mrb[4].mxu1 }
 0x1f3   :  { %v860_v35 = vpop.f32.mrb[5].mxu1  ;;  %v489_v36 = vsel %vm485_vm2, %v481_v34, -inf }
 0x1f4   :  { %490 = vmax.xlane.f32.xlu0 %v489_v36 }
 0x27d   :  { %v488_v37 = vpop.xlane.xlu0 %487 }
 0x27e   :  { %v492_v38 = vsub.f32 %v405_v31, %v488_v37 }
 0x280   :  { %v494_v39 = vmul.f32 1.442695, %v492_v38 }
 0x281   :  { %v491_v40 = vpop.xlane.xlu0 %490 }
 0x282   :  { %922 = vpow2.f32 %v494_v39  ;;  %v493_v41 = vsub.f32 %v481_v34, %v491_v40 }
 0x284   :  { %v496_v42 = vmul.f32 1.442695, %v493_v41 }
 0x286   :  { %924 = vpow2.f32 %v496_v42 }
 0x28c   :  { %v923_v43 = vpop.eup %922 }
 0x28d   :  { %v498_v44 = vsel %vm485_vm2, %v923_v43, 0.0 }
 0x28e   :  { %499 = vadd.xlane.f32.xlu1 %v498_v44 }
 0x290   :  { %v925_v45 = vpop.eup %924 }
 0x291   :  { %v501_v46 = vsel %vm485_vm2, %v925_v45, 0.0 }
 0x292   :  { %502 = vadd.xlane.f32.xlu1 %v501_v46 }
 0x31b   :  { %v500_v55 = vpop.xlane.xlu1 %499 }
 0x31c   :  { %926 = vrcp.f32 %v500_v55 }
 0x31f   :  { %v503_v56 = vpop.xlane.xlu1 %502 }
 0x320   :  { %928 = vrcp.f32 %v503_v56 }
 0x326   :  { %v927_v57 = vpop.eup %926 }
 0x327   :  { %v506_v58 = vmul.f32 %v927_v57, %v923_v43 }
 0x329   :  { %864 = vmatmul.mubr.msk.f32.vlgmr.msra.gmra.mrb[6].mxu1 %vm485_vm2, %v506_v58 }
 0x32a   :  { %v929_v59 = vpop.eup %928  ;;  %867 = vmatpush3.msra.mxu1 %v330_v50  ;;  %868 = vmatprep.mubr.msk.f32.mxu1 %vm1030_vm1, %v1029_v14 }
 0x32b   :  { %v507_v60 = vmul.f32 %v929_v59, %v925_v45 }
 0x32d   :  { %869 = vmatmul.mubr.msk.f32.vlgmr.msra.gmra.mrb[8].mxu1 %vm485_vm2, %v507_v60 }
 0x3fc   :  { %v577_v0 = vpop.f32.mrb[6].mxu1 }
 0x3fd   :  { %v865_v1 = vpop.f32.mrb[7].mxu1  ;;  %879 = vmatprep.mubr.msk.f32.mxu0 %vm75_vm0, %v577_v0 }
 0x400   :  { %v650_v2 = vpop.f32.mrb[8].mxu1 }
 0x401   :  { %v870_v3 = vpop.f32.mrb[9].mxu1  ;;  %880 = vmatmul.mubr.msk.f32.vlgmr.msra.gmra.mrb[4].mxu0 %vm75_vm0, %v650_v2 }
 0x4d4   :  { %v881_v5 = vpop.f32.mrb[4].mxu0 }
 0x4d5   :  { %v743_v6 = vadd.f32 %v881_v5, %v783_v4  ;;  %v737_v7 = vpop.f32.mrb[5].mxu0 }
 0x4d6   :  { %v738_v8 = vadd.f32 %v783_v4, %v737_v7 }
 0x4d7   :  { %747 = vst.msk [vmem:[#allocation8 + $0x8] sm:$0xff] %vm75_vm0, %v743_v6 }
 0x4d8   :  { %746 = vst.msk [vmem:[#allocation8] sm:$0xff] %vm75_vm0, %v738_v8 }
 0x4d9   :  { %1007 = shalt.err (!%p1004_p0)
}
 0x4da   :  { %s1008_s16 = scalar_lea.hbm %s1178_s5, 256 }
 0x4db   :  { %p1009_p1 = scmp.ne.s32.totalorder %s1178_s5, %s1008_s16  ;;  %p1012_p2 = scmp.lt.u32.totalorder %s1008_s16, %s1178_s5 }
 0x4dd   :  { %p1014_p3 = pnand %p1012_p2, %p1009_p1 }
 0x4df   :  { %1017 = shalt.err (!%p1014_p3)
}
 0x4e0   :  { %759 = dma.vmem_to_hbm [thread:$0]  %s754_s13, 256, %s1178_s5, [#allocation4], %s1026_s30, %s1026_s30, %s1027_s6  }
 0x4e1   :  { %1022 = dma.done.wait [#allocation4], 256  }
 0x4e2   :  { %1023 = vsyncadd [#allocation4], 4294967040 }
 0x4e3   :  { %763 = vsyncpa [#allocation3], 1 }
 0x4e4   :  { %764 = vsyncpa [#allocation6], 1 }
 0x4e5   :  { %765 = vsyncpa [#allocation4], 1 }

</bundles_post_ra>
